<compile_context>
chip_gen: v6e
topology: v6e:2x2x1
jax: 0.10.0
libtpu: 0.0.40
codegen_flags: <defaults>
</compile_context>

<pallas_src>
import math
from functools import partial

import jax
import jax.numpy as jnp
from jax.experimental import pallas as pl
from jax.experimental.pallas import tpu as pltpu

LN_EPS = 1e-5  # nn.LayerNorm default


def _ffn_kernel(x_ref, w_ref, b_ref, gamma_ref, beta_ref, ones_ref, o_ref, *, seg):
    # x_ref:            (tm, P*D)   streamed per grid step (P tokens per row)
    # w_ref:            (P*D, P*D)  block-diagonal weight, resident
    # b/gamma/beta_ref: (1, P*D)    resident (bias / LN affine, tiled P times)
    # ones_ref:         (P*D, P*D)  block-diagonal ones (f32), segment-sum operator
    # o_ref:            (tm, P*D)
    x = x_ref[...]

    # Linear: MXU matmul with f32 accumulation; operands stay in native dtype.
    y = jnp.dot(x, w_ref[...], preferred_element_type=jnp.float32)
    y = y + b_ref[...].astype(jnp.float32)

    # Activation: sigmoid (exp on the EUP).
    y = jax.nn.sigmoid(y)

    # dropout_rate=None -> no dropout.
    # Skip connection (input_dim == output_dim, checked in wrapper).
    y = y + x.astype(jnp.float32)

    # Per-token LayerNorm over each `seg`-lane segment, two-pass.
    # (y @ ones_blockdiag)[i, j] = sum of y[i, :] over the segment containing j,
    # already broadcast across the segment -> stats on the MXU, no XLU sweeps.
    inv_d = 1.0 / seg
    mean = jnp.dot(y, ones_ref[...], preferred_element_type=jnp.float32) * inv_d
    c = y - mean
    var = jnp.dot(c * c, ones_ref[...], preferred_element_type=jnp.float32) * inv_d
    y = c * jax.lax.rsqrt(var + LN_EPS)
    y = y * gamma_ref[...].astype(jnp.float32) + beta_ref[...].astype(jnp.float32)

    o_ref[...] = y.astype(o_ref.dtype)


def _pack_factor(m, d):
    """Largest power-of-two p with m % p == 0 and p*d == 128 (target lane width)."""
    if d >= 128 or 128 % d != 0:
        return 1
    p, target = 1, 128 // d
    while p < target and m % (2 * p) == 0:
        p *= 2
    return p


def single_feedforward_nn(x, weight_t, bias, gamma, beta, *, tm=2048):
    """x: [..., D_in]; weight_t: (D_in, D_out); bias/gamma/beta: (D_out,)."""
    d_in = x.shape[-1]
    d_out = weight_t.shape[1]
    assert weight_t.shape[0] == d_in
    # Skip connection in this module only applies when dims match.
    assert d_in == d_out, "skip connection requires input_dim == output_dim"
    d = d_out

    lead = x.shape[:-1]
    m = math.prod(lead) if lead else 1

    # ---- token packing: lane dim becomes p*d (128 when possible) --------------
    p = _pack_factor(m, d)
    dp = p * d
    mp = m // p
    x2 = x.reshape(mp, dp)  # row-major view; no copy, no padding

    dtype = x.dtype
    itemsize = jnp.dtype(dtype).itemsize

    w_bd = jnp.kron(jnp.eye(p, dtype=weight_t.dtype), weight_t)            # (dp, dp)
    ones_bd = jnp.kron(jnp.eye(p, dtype=jnp.float32),
                       jnp.ones((d, d), jnp.float32))                       # (dp, dp)
    b_p = jnp.tile(bias.reshape(1, d), (1, p))
    g_p = jnp.tile(gamma.reshape(1, d), (1, p))
    be_p = jnp.tile(beta.reshape(1, d), (1, p))

    # ---- row tiling: MiB-scale streamed tiles, ragged last tile masked --------
    if mp <= tm:
        tm_eff = mp                      # single block == full extent (any size ok)
    else:
        tm_eff = max(8, (tm // 8) * 8)   # sublane-aligned tile
    grid = (pl.cdiv(mp, tm_eff),)

    # ---- generation-aware VMEM budget (v7x: 64 MiB physical) ------------------
    try:
        vmem_cap = int(pltpu.get_tpu_info().vmem_capacity_bytes)
    except Exception:  # pragma: no cover - conservative fallback
        vmem_cap = 64 * 1024 * 1024
    resident = 2 * (dp * dp * itemsize + dp * dp * 4 + 3 * dp * itemsize)
    streamed = 2 * 2 * tm_eff * dp * itemsize      # double-buffered x + out tiles
    epilogue = 6 * tm_eff * dp * 4                 # f32 temporaries headroom
    vmem_need = resident + streamed + epilogue
    vmem_limit = int(min(max(2 * vmem_need, 16 << 20), (vmem_cap * 7) // 8))

    cost = pl.CostEstimate(
        flops=2 * mp * dp * dp * 3,                # linear + 2 segment-sum matmuls
        transcendentals=mp * dp,                   # sigmoid exp per output elem
        bytes_accessed=(2 * mp * dp + 2 * dp * dp + 3 * dp) * itemsize,
    )

    out = pl.pallas_call(
        partial(_ffn_kernel, seg=d),
        out_shape=jax.ShapeDtypeStruct((mp, dp), dtype),
        grid_spec=pltpu.PrefetchScalarGridSpec(
            num_scalar_prefetch=0,
            grid=grid,
            in_specs=[
                pl.BlockSpec((tm_eff, dp), lambda i: (i, 0)),   # streamed x (packed)
                pl.BlockSpec((dp, dp), lambda i: (0, 0)),       # resident block-diag W
                pl.BlockSpec((1, dp), lambda i: (0, 0)),        # resident bias
                pl.BlockSpec((1, dp), lambda i: (0, 0)),        # resident gamma
                pl.BlockSpec((1, dp), lambda i: (0, 0)),        # resident beta
                pl.BlockSpec((dp, dp), lambda i: (0, 0)),       # resident seg-sum ones
            ],
            out_specs=pl.BlockSpec((tm_eff, dp), lambda i: (i, 0)),
        ),
        compiler_params=pltpu.CompilerParams(
            dimension_semantics=("parallel",),     # rows independent -> megacore
            vmem_limit_bytes=vmem_limit,
        ),
        cost_estimate=cost,
    )(x2, w_bd, b_p, g_p, be_p, ones_bd)

    return out.reshape(*lead, d) if lead else out.reshape(d)


def reference(x, weight_t, bias, gamma, beta):
    y = jnp.dot(x.astype(jnp.float32), weight_t.astype(jnp.float32)) + bias
    y = jax.nn.sigmoid(y)
    y = y + x.astype(jnp.float32)
    mean = jnp.mean(y, axis=-1, keepdims=True)
    var = jnp.mean((y - mean) ** 2, axis=-1, keepdims=True)
    y = (y - mean) / jnp.sqrt(var + LN_EPS)
    return y * gamma + beta


if __name__ == "__main__":
    key = jax.random.PRNGKey(0)
    batch, seq = 2, 8
    input_dim = output_dim = 32  # equal dims -> skip_connection active

    k_x, k_w, k_b = jax.random.split(key, 3)
    x = jax.random.normal(k_x, (batch, seq, input_dim), dtype=jnp.float32)

    # xavier_uniform for the linear weight (PyTorch shape (out, in)); stored transposed.
    limit = math.sqrt(6.0 / (input_dim + output_dim))
    weight = jax.random.uniform(k_w, (output_dim, input_dim),
                                minval=-limit, maxval=limit, dtype=jnp.float32)
    weight_t = weight.T
    # nn.Linear default bias init: U(-1/sqrt(fan_in), 1/sqrt(fan_in))
    b_lim = 1.0 / math.sqrt(input_dim)
    bias = jax.random.uniform(k_b, (output_dim,),
                              minval=-b_lim, maxval=b_lim, dtype=jnp.float32)
    # nn.LayerNorm default affine params
    gamma = jnp.ones((output_dim,), dtype=jnp.float32)
    beta = jnp.zeros((output_dim,), dtype=jnp.float32)

    out = single_feedforward_nn(x, weight_t, bias, gamma, beta)
    out = jax.block_until_ready(out)

    ref = reference(x, weight_t, bias, gamma, beta)
    assert out.shape == (batch, seq, output_dim)
    assert jnp.allclose(out, ref, atol=1e-4, rtol=1e-4), (
        float(jnp.max(jnp.abs(out - ref))))

    print("KERNEL_OK")
</pallas_src>

<mosaic_0001>
module attributes {stable_mosaic.version = 11 : i64} {
  func.func @_ffn_kernel(%arg0: i32, %arg1: memref<4x128xf32, #tpu.memory_space<vmem>>, %arg2: memref<128x128xf32, #tpu.memory_space<vmem>>, %arg3: memref<1x128xf32, #tpu.memory_space<vmem>>, %arg4: memref<1x128xf32, #tpu.memory_space<vmem>>, %arg5: memref<1x128xf32, #tpu.memory_space<vmem>>, %arg6: memref<128x128xf32, #tpu.memory_space<vmem>>, %arg7: memref<4x128xf32, #tpu.memory_space<vmem>>) attributes {dimension_semantics = [#tpu.dimension_semantics<parallel>], iteration_bounds = array<i64: 1>, scalar_prefetch = 0 : i64, scratch_operands = 0 : i64, tpu.core_type = #tpu.core_type<tc>, window_params = [{transform_indices = @transform_0, window_bounds = array<i64: 4, 128>}, {pipeline_mode = #tpu.pipeline_mode<synchronous>, transform_indices = @transform_1, window_bounds = array<i64: 128, 128>}, {pipeline_mode = #tpu.pipeline_mode<synchronous>, transform_indices = @transform_2, window_bounds = array<i64: 1, 128>}, {pipeline_mode = #tpu.pipeline_mode<synchronous>, transform_indices = @transform_3, window_bounds = array<i64: 1, 128>}, {pipeline_mode = #tpu.pipeline_mode<synchronous>, transform_indices = @transform_4, window_bounds = array<i64: 1, 128>}, {pipeline_mode = #tpu.pipeline_mode<synchronous>, transform_indices = @transform_5, window_bounds = array<i64: 128, 128>}, {transform_indices = @transform_6, window_bounds = array<i64: 4, 128>}]} {
    %c0 = arith.constant 0 : index
    %c0_0 = arith.constant 0 : index
    %0 = vector.load %arg1[%c0, %c0_0] : memref<4x128xf32, #tpu.memory_space<vmem>>, vector<4x128xf32>
    %c0_1 = arith.constant 0 : index
    %c0_2 = arith.constant 0 : index
    %1 = vector.load %arg2[%c0_1, %c0_2] : memref<128x128xf32, #tpu.memory_space<vmem>>, vector<128x128xf32>
    %cst = arith.constant dense<0.000000e+00> : vector<4x128xf32>
    %2 = tpu.matmul %0, %1, %cst {dimension_numbers = #tpu.dot_dimension_numbers<[1], [0], [0], [1], [0, 0, 1, 1], [], []>} : vector<4x128xf32>, vector<128x128xf32>, vector<4x128xf32> -> vector<4x128xf32>
    %c0_3 = arith.constant 0 : index
    %c0_4 = arith.constant 0 : index
    %3 = vector.load %arg3[%c0_3, %c0_4] : memref<1x128xf32, #tpu.memory_space<vmem>>, vector<1x128xf32>
    %4 = vector.broadcast %3 : vector<1x128xf32> to vector<4x128xf32>
    %5 = arith.addf %2, %4 : vector<4x128xf32>
    %6 = arith.negf %5 : vector<4x128xf32>
    %7 = math.exp %6 : vector<4x128xf32>
    %cst_5 = arith.constant 1.000000e+00 : f32
    %8 = vector.broadcast %cst_5 : f32 to vector<4x128xf32>
    %9 = arith.addf %8, %7 : vector<4x128xf32>
    %10 = arith.divf %8, %9 : vector<4x128xf32>
    %11 = arith.addf %10, %0 : vector<4x128xf32>
    %c0_6 = arith.constant 0 : index
    %c0_7 = arith.constant 0 : index
    %12 = vector.load %arg6[%c0_6, %c0_7] : memref<128x128xf32, #tpu.memory_space<vmem>>, vector<128x128xf32>
    %cst_8 = arith.constant dense<0.000000e+00> : vector<4x128xf32>
    %13 = tpu.matmul %11, %12, %cst_8 {dimension_numbers = #tpu.dot_dimension_numbers<[1], [0], [0], [1], [0, 0, 1, 1], [], []>} : vector<4x128xf32>, vector<128x128xf32>, vector<4x128xf32> -> vector<4x128xf32>
    %cst_9 = arith.constant 3.125000e-02 : f32
    %14 = vector.broadcast %cst_9 : f32 to vector<4x128xf32>
    %15 = arith.mulf %13, %14 : vector<4x128xf32>
    %16 = arith.subf %11, %15 : vector<4x128xf32>
    %17 = arith.mulf %16, %16 : vector<4x128xf32>
    %c0_10 = arith.constant 0 : index
    %c0_11 = arith.constant 0 : index
    %18 = vector.load %arg6[%c0_10, %c0_11] : memref<128x128xf32, #tpu.memory_space<vmem>>, vector<128x128xf32>
    %cst_12 = arith.constant dense<0.000000e+00> : vector<4x128xf32>
    %19 = tpu.matmul %17, %18, %cst_12 {dimension_numbers = #tpu.dot_dimension_numbers<[1], [0], [0], [1], [0, 0, 1, 1], [], []>} : vector<4x128xf32>, vector<128x128xf32>, vector<4x128xf32> -> vector<4x128xf32>
    %cst_13 = arith.constant 3.125000e-02 : f32
    %20 = vector.broadcast %cst_13 : f32 to vector<4x128xf32>
    %21 = arith.mulf %19, %20 : vector<4x128xf32>
    %cst_14 = arith.constant 9.99999974E-6 : f32
    %22 = vector.broadcast %cst_14 : f32 to vector<4x128xf32>
    %23 = arith.addf %21, %22 : vector<4x128xf32>
    %24 = math.rsqrt %23 : vector<4x128xf32>
    %25 = arith.mulf %16, %24 : vector<4x128xf32>
    %c0_15 = arith.constant 0 : index
    %c0_16 = arith.constant 0 : index
    %26 = vector.load %arg4[%c0_15, %c0_16] : memref<1x128xf32, #tpu.memory_space<vmem>>, vector<1x128xf32>
    %27 = vector.broadcast %26 : vector<1x128xf32> to vector<4x128xf32>
    %28 = arith.mulf %25, %27 : vector<4x128xf32>
    %c0_17 = arith.constant 0 : index
    %c0_18 = arith.constant 0 : index
    %29 = vector.load %arg5[%c0_17, %c0_18] : memref<1x128xf32, #tpu.memory_space<vmem>>, vector<1x128xf32>
    %30 = vector.broadcast %29 : vector<1x128xf32> to vector<4x128xf32>
    %31 = arith.addf %28, %30 : vector<4x128xf32>
    %c0_19 = arith.constant 0 : index
    %c0_20 = arith.constant 0 : index
    %32 = vector.load %arg7[%c0_19, %c0_20] : memref<4x128xf32, #tpu.memory_space<vmem>>, vector<4x128xf32>
    tpu.vector_store %arg7[%c0_19, %c0_20], %31 {strides = array<i32>} : memref<4x128xf32, #tpu.memory_space<vmem>>, vector<4x128xf32>,
    return
  }
  func.func @transform_0(%arg0: i32) -> (i32, i32) {
    %c0_i32 = arith.constant 0 : i32
    %c0_i32_0 = arith.constant 0 : i32
    return %arg0, %c0_i32 : i32, i32
  }
  func.func @transform_1(%arg0: i32) -> (i32, i32) {
    %c0_i32 = arith.constant 0 : i32
    %c0_i32_0 = arith.constant 0 : i32
    %c0_i32_1 = arith.constant 0 : i32
    return %c0_i32, %c0_i32_0 : i32, i32
  }
  func.func @transform_2(%arg0: i32) -> (i32, i32) {
    %c0_i32 = arith.constant 0 : i32
    %c0_i32_0 = arith.constant 0 : i32
    %c0_i32_1 = arith.constant 0 : i32
    return %c0_i32, %c0_i32_0 : i32, i32
  }
  func.func @transform_3(%arg0: i32) -> (i32, i32) {
    %c0_i32 = arith.constant 0 : i32
    %c0_i32_0 = arith.constant 0 : i32
    %c0_i32_1 = arith.constant 0 : i32
    return %c0_i32, %c0_i32_0 : i32, i32
  }
  func.func @transform_4(%arg0: i32) -> (i32, i32) {
    %c0_i32 = arith.constant 0 : i32
    %c0_i32_0 = arith.constant 0 : i32
    %c0_i32_1 = arith.constant 0 : i32
    return %c0_i32, %c0_i32_0 : i32, i32
  }
  func.func @transform_5(%arg0: i32) -> (i32, i32) {
    %c0_i32 = arith.constant 0 : i32
    %c0_i32_0 = arith.constant 0 : i32
    %c0_i32_1 = arith.constant 0 : i32
    return %c0_i32, %c0_i32_0 : i32, i32
  }
  func.func @transform_6(%arg0: i32) -> (i32, i32) {
    %c0_i32 = arith.constant 0 : i32
    %c0_i32_0 = arith.constant 0 : i32
    return %arg0, %c0_i32 : i32, i32
  }
}

</mosaic_0001>

<bundles_post_ra>
// kernel: tpu_custom_call.1
= control target key start
LH: loop header
LB: loop body
LE: loop exit
PB: predicated region body
PF: predicated region fallthrough
CT: control target
= control target key end

     0   :  { %11 = vsyncpa [#allocation3], 0  ;;  %s742_s0 = inlined_call_operand.hbm [shape: f32[4,128], index: 0, kind: input, shape index: {}]   ;;  %s743_s1 = inlined_call_operand.hbm [shape: f32[128,128], index: 1, kind: input, shape index: {}]   ;;  %s744_s2 = inlined_call_operand.vmem [shape: f32[1,128], index: 2, kind: input, shape index: {}]   ;;  %s745_s3 = inlined_call_operand.vmem [shape: f32[1,128], index: 3, kind: input, shape index: {}]   ;;  %s746_s4 = inlined_call_operand.vmem [shape: f32[1,128], index: 4, kind: input, shape index: {}]   ;;  %s747_s5 = inlined_call_operand.hbm [shape: f32[128,128], index: 5, kind: input, shape index: {}]   ;;  %s748_s6 = inlined_call_operand.hbm [shape: f32[4,128], index: 6, kind: output, shape index: {}]  }
   0x1   :  { %12 = vsyncpa [#allocation6], 0 }
   0x2   :  { %13 = vsyncpa [#allocation4], 0  ;;  %s620_s21 = smov [#allocation5]  }
   0x3   :  { %s29_s22 = sshll.u32 %s620_s21, 4  ;;  %s30_s22 = int_to_ptr.vmem [resolvable:$true] %s29_s22 }
   0x4   :  { %s542_s23 = scalar_lea.vmem %s30_s22, 2048  ;;  %p547_p1 = scmp.lt.s32.totalorder %s30_s22, %s30_s22 }
   0x5   :  { %p543_p0 = scmp.ne.s32.totalorder %s30_s22, %s542_s23  ;;  %p548_p2 = scmp.lt.s32.totalorder %s542_s23, %s542_s23 }
   0x7   :  { %p549_p3 = por %p548_p2, %p547_p1 }
   0x9   :  { %p550_p4 = pnand %p549_p3, %p543_p0 }
   0xb   :  { %553 = shalt.err (!%p550_p4)
}
   0xc   :  { %s621_s24 = smov 128   ;;  %s622_s25 = smov 8  }
   0xd   :  { %35 = dma.hbm_to_vmem [thread:$0]  %s743_s1, 2048, %s30_s22, [#allocation6], %s621_s24, %s621_s24, %s622_s25  }
   0xe   :  { %s623_s28 = smov [#allocation2]   ;;  %s624_s30 = smov [#allocation7]  }
   0xf   :  { %s20_s29 = sshll.u32 %s623_s28, 4  ;;  %s47_s7 = sshll.u32 %s624_s30, 4  ;;  %s21_s29 = int_to_ptr.vmem [resolvable:$true] %s20_s29  ;;  %s48_s7 = int_to_ptr.vmem [resolvable:$true] %s47_s7 }
  0x10   :  { %s562_s8 = scalar_lea.vmem %s21_s29, 64  ;;  %p567_p6 = scmp.lt.s32.totalorder %s21_s29, %s21_s29 }
  0x11   :  { %p563_p5 = scmp.ne.s32.totalorder %s21_s29, %s562_s8  ;;  %p568_p7 = scmp.lt.s32.totalorder %s562_s8, %s562_s8 }
  0x13   :  { %p569_p8 = por %p568_p7, %p567_p6 }
  0x15   :  { %p570_p9 = pnand %p569_p8, %p563_p5 }
  0x17   :  { %573 = shalt.err (!%p570_p9)
}
  0x18   :  { %23 = dma.hbm_to_vmem [thread:$0]  %s742_s0, 64, %s21_s29, [#allocation3]  }
  0x19   :  { %s582_s11 = scalar_lea.vmem %s48_s7, 2048  ;;  %p587_p11 = scmp.lt.s32.totalorder %s48_s7, %s48_s7 }
  0x1a   :  { %p583_p10 = scmp.ne.s32.totalorder %s48_s7, %s582_s11  ;;  %p588_p12 = scmp.lt.s32.totalorder %s582_s11, %s582_s11 }
  0x1c   :  { %p589_p13 = por %p588_p12, %p587_p11 }
  0x1e   :  { %p590_p0 = pnand %p589_p13, %p583_p10 }
  0x20   :  { %593 = shalt.err (!%p590_p0)
}
  0x21   :  { %53 = dma.hbm_to_vmem [thread:$0]  %s747_s5, 2048, %s48_s7, [#allocation6], %s621_s24, %s621_s24, %s622_s25  }
  0x22   :  { %614 = dma.done.wait [#allocation3], 64  }
  0x23   :  { %615 = vsyncadd [#allocation3], 4294967232 }
  0x24   :  { %616 = dma.done.wait [#allocation6], 4096  }
  0x25   :  { %617 = vsyncadd [#allocation6], 4294963200  ;;  %v625_v0 = vmov 0.0   ;;  %vm626_vm0 = vmmov 0   ;;  %v79_v1 = vld [vmem:[#allocation5 + $0x78] sm:$0xff]  ;;  %v78_v2 = vld [vmem:[#allocation5 + $0x70] sm:$0xff] }
  0x26   :  { %415 = vmatprep.subr.mxu0 %v625_v0  ;;  %447 = vmatprep.mubr.msk.f32.mxu0 %vm626_vm0, %v625_v0  ;;  %v77_v3 = vld [vmem:[#allocation5 + $0x68] sm:$0xff]  ;;  %v76_v4 = vld [vmem:[#allocation5 + $0x60] sm:$0xff]  ;;  %v75_v5 = vld [vmem:[#allocation5 + $0x58] sm:$0xff]  ;;  %s627_s16 = smov [#allocation8]  }
  0x27   :  { %450 = vmatprep.subr.mxu1 %v625_v0  ;;  %482 = vmatprep.mubr.msk.f32.mxu1 %vm626_vm0, %v625_v0  ;;  %v74_v6 = vld [vmem:[#allocation5 + $0x50] sm:$0xff]  ;;  %v73_v7 = vld [vmem:[#allocation5 + $0x48] sm:$0xff]  ;;  %v72_v8 = vld [vmem:[#allocation5 + $0x40] sm:$0xff]  ;;  %s350_s17 = sshll.u32 %s627_s16, 4  ;;  %s351_s17 = int_to_ptr.vmem [resolvable:$true] %s350_s17 }
  0x28   :  { %416 = vmatpush3.msra.mxu0 %v79_v1  ;;  %v71_v9 = vld [vmem:[#allocation5 + $0x38] sm:$0xff]  ;;  %v70_v10 = vld [vmem:[#allocation5 + $0x30] sm:$0xff]  ;;  %v69_v11 = vld [vmem:[#allocation5 + $0x28] sm:$0xff]  ;;  %s594_s18 = scalar_lea.vmem %s351_s17, 64  ;;  %p599_p2 = scmp.lt.s32.totalorder %s351_s17, %s351_s17 }
  0x29   :  { %417 = vmatprep.subr.mxu0 %v625_v0  ;;  %v68_v12 = vld [vmem:[#allocation5 + $0x20] sm:$0xff]  ;;  %v67_v13 = vld [vmem:[#allocation5 + $0x18] sm:$0xff]  ;;  %v66_v14 = vld [vmem:[#allocation5 + $0x10] sm:$0xff]  ;;  %p595_p1 = scmp.ne.s32.totalorder %s351_s17, %s594_s18  ;;  %p600_p3 = scmp.lt.s32.totalorder %s594_s18, %s594_s18 }
  0x2a   :  { %418 = vmatpush3.msra.mxu0 %v78_v2  ;;  %v65_v15 = vld [vmem:[#allocation5 + $0x8] sm:$0xff]  ;;  %v64_v16 = vld [vmem:[#allocation5] sm:$0xff]  ;;  %v692_v17 = vld [vmem:[#allocation2] sm:$0xf] }
  0x2b   :  { %419 = vmatprep.subr.mxu0 %v625_v0  ;;  %v179_v18 = vld [vmem:[#allocation7 + $0x78] sm:$0xff]  ;;  %v178_v19 = vld [vmem:[#allocation7 + $0x70] sm:$0xff]  ;;  %v177_v20 = vld [vmem:[#allocation7 + $0x68] sm:$0xff]  ;;  %p601_p4 = por %p600_p3, %p599_p2 }
  0x2c   :  { %420 = vmatpush3.msra.mxu0 %v77_v3  ;;  %451 = vmatpush3.msra.mxu1 %v179_v18  ;;  %v176_v21 = vld [vmem:[#allocation7 + $0x60] sm:$0xff]  ;;  %v175_v22 = vld [vmem:[#allocation7 + $0x58] sm:$0xff]  ;;  %v174_v23 = vld [vmem:[#allocation7 + $0x50] sm:$0xff] }
  0x2d   :  { %421 = vmatprep.subr.mxu0 %v625_v0  ;;  %452 = vmatprep.subr.mxu1 %v625_v0  ;;  %v173_v24 = vld [vmem:[#allocation7 + $0x48] sm:$0xff]  ;;  %v172_v25 = vld [vmem:[#allocation7 + $0x40] sm:$0xff]  ;;  %v171_v26 = vld [vmem:[#allocation7 + $0x38] sm:$0xff]  ;;  %p602_p5 = pnand %p601_p4, %p595_p1 }
  0x2e   :  { %422 = vmatpush3.msra.mxu0 %v76_v4  ;;  %453 = vmatpush3.msra.mxu1 %v178_v19  ;;  %v170_v27 = vld [vmem:[#allocation7 + $0x30] sm:$0xff]  ;;  %v169_v28 = vld [vmem:[#allocation7 + $0x28] sm:$0xff]  ;;  %v168_v29 = vld [vmem:[#allocation7 + $0x20] sm:$0xff] }
  0x2f   :  { %423 = vmatprep.subr.mxu0 %v625_v0  ;;  %454 = vmatprep.subr.mxu1 %v625_v0  ;;  %v167_v30 = vld [vmem:[#allocation7 + $0x18] sm:$0xff]  ;;  %v166_v31 = vld [vmem:[#allocation7 + $0x10] sm:$0xff]  ;;  %v165_v32 = vld [vmem:[#allocation7 + $0x8] sm:$0xff] }
  0x30   :  { %424 = vmatpush3.msra.mxu0 %v75_v5  ;;  %455 = vmatpush3.msra.mxu1 %v177_v20  ;;  %v164_v33 = vld [vmem:[#allocation7] sm:$0xff]  ;;  %v360_v34 = vld [vmem:[%s744_s2] ss:$0 sm:$0xff] }
  0x31   :  { %425 = vmatprep.subr.mxu0 %v625_v0  ;;  %456 = vmatprep.subr.mxu1 %v625_v0  ;;  %v362_v53 = vld [vmem:[%s745_s3] ss:$0 sm:$0xff] }
  0x32   :  { %426 = vmatpush3.msra.mxu0 %v74_v6  ;;  %457 = vmatpush3.msra.mxu1 %v176_v21  ;;  %v363_v55 = vld [vmem:[%s746_s4] ss:$0 sm:$0xff] }
  0x33   :  { %427 = vmatprep.subr.mxu0 %v625_v0  ;;  %458 = vmatprep.subr.mxu1 %v625_v0 }
  0x34   :  { %428 = vmatpush3.msra.mxu0 %v73_v7  ;;  %459 = vmatpush3.msra.mxu1 %v175_v22 }
  0x35   :  { %429 = vmatprep.subr.mxu0 %v625_v0  ;;  %460 = vmatprep.subr.mxu1 %v625_v0 }
  0x36   :  { %430 = vmatpush3.msra.mxu0 %v72_v8  ;;  %461 = vmatpush3.msra.mxu1 %v174_v23 }
  0x37   :  { %431 = vmatprep.subr.mxu0 %v625_v0  ;;  %462 = vmatprep.subr.mxu1 %v625_v0 }
  0x38   :  { %432 = vmatpush3.msra.mxu0 %v71_v9  ;;  %463 = vmatpush3.msra.mxu1 %v173_v24 }
  0x39   :  { %433 = vmatprep.subr.mxu0 %v625_v0  ;;  %464 = vmatprep.subr.mxu1 %v625_v0 }
  0x3a   :  { %434 = vmatpush3.msra.mxu0 %v70_v10  ;;  %465 = vmatpush3.msra.mxu1 %v172_v25 }
  0x3b   :  { %435 = vmatprep.subr.mxu0 %v625_v0  ;;  %466 = vmatprep.subr.mxu1 %v625_v0 }
  0x3c   :  { %436 = vmatpush3.msra.mxu0 %v69_v11  ;;  %467 = vmatpush3.msra.mxu1 %v171_v26 }
  0x3d   :  { %437 = vmatprep.subr.mxu0 %v625_v0  ;;  %468 = vmatprep.subr.mxu1 %v625_v0 }
  0x3e   :  { %438 = vmatpush3.msra.mxu0 %v68_v12  ;;  %469 = vmatpush3.msra.mxu1 %v170_v27 }
  0x3f   :  { %439 = vmatprep.subr.mxu0 %v625_v0  ;;  %470 = vmatprep.subr.mxu1 %v625_v0 }
  0x40   :  { %440 = vmatpush3.msra.mxu0 %v67_v13  ;;  %471 = vmatpush3.msra.mxu1 %v169_v28 }
  0x41   :  { %441 = vmatprep.subr.mxu0 %v625_v0  ;;  %472 = vmatprep.subr.mxu1 %v625_v0 }
  0x42   :  { %442 = vmatpush3.msra.mxu0 %v66_v14  ;;  %473 = vmatpush3.msra.mxu1 %v168_v29 }
  0x43   :  { %443 = vmatprep.subr.mxu0 %v625_v0  ;;  %474 = vmatprep.subr.mxu1 %v625_v0 }
  0x44   :  { %444 = vmatpush3.msra.mxu0 %v65_v15  ;;  %475 = vmatpush3.msra.mxu1 %v167_v30 }
  0x45   :  { %445 = vmatprep.subr.mxu0 %v625_v0  ;;  %476 = vmatprep.subr.mxu1 %v625_v0 }
  0x46   :  { %446 = vmatpush3.msra.mxu0 %v64_v16  ;;  %477 = vmatpush3.msra.mxu1 %v166_v31 }
  0x47   :  { %448 = vmatmul.mubr.f32.vlgmr.msra.gmra.mxu0 %v692_v17  ;;  %485 = vmatprep.subr.mxu0 %v625_v0 }
  0x48   :  { %517 = vmatprep.mubr.msk.f32.mxu0 %vm626_vm0, %v625_v0  ;;  %486 = vmatpush3.msra.mxu0 %v179_v18 }
  0x49   :  { %487 = vmatprep.subr.mxu0 %v625_v0  ;;  %478 = vmatprep.subr.mxu1 %v625_v0 }
  0x4a   :  { %488 = vmatpush3.msra.mxu0 %v178_v19  ;;  %479 = vmatpush3.msra.mxu1 %v165_v32 }
  0x4b   :  { %489 = vmatprep.subr.mxu0 %v625_v0  ;;  %480 = vmatprep.subr.mxu1 %v625_v0 }
  0x4c   :  { %490 = vmatpush3.msra.mxu0 %v177_v20  ;;  %481 = vmatpush3.msra.mxu1 %v164_v33 }
  0x4d   :  { %491 = vmatprep.subr.mxu0 %v625_v0 }
  0x4e   :  { %492 = vmatpush3.msra.mxu0 %v176_v21 }
  0x4f   :  { %493 = vmatprep.subr.mxu0 %v625_v0 }
  0x50   :  { %494 = vmatpush3.msra.mxu0 %v175_v22 }
  0x51   :  { %495 = vmatprep.subr.mxu0 %v625_v0 }
  0x52   :  { %496 = vmatpush3.msra.mxu0 %v174_v23 }
  0x53   :  { %497 = vmatprep.subr.mxu0 %v625_v0 }
  0x54   :  { %498 = vmatpush3.msra.mxu0 %v173_v24 }
  0x55   :  { %499 = vmatprep.subr.mxu0 %v625_v0 }
  0x56   :  { %500 = vmatpush3.msra.mxu0 %v172_v25 }
  0x57   :  { %501 = vmatprep.subr.mxu0 %v625_v0 }
  0x58   :  { %502 = vmatpush3.msra.mxu0 %v171_v26 }
  0x59   :  { %503 = vmatprep.subr.mxu0 %v625_v0 }
  0x5a   :  { %504 = vmatpush3.msra.mxu0 %v170_v27 }
  0x5b   :  { %505 = vmatprep.subr.mxu0 %v625_v0 }
  0x5c   :  { %506 = vmatpush3.msra.mxu0 %v169_v28 }
  0x5d   :  { %507 = vmatprep.subr.mxu0 %v625_v0 }
  0x5e   :  { %508 = vmatpush3.msra.mxu0 %v168_v29 }
  0x5f   :  { %509 = vmatprep.subr.mxu0 %v625_v0 }
  0x60   :  { %510 = vmatpush3.msra.mxu0 %v167_v30 }
  0x61   :  { %511 = vmatprep.subr.mxu0 %v625_v0 }
  0x62   :  { %512 = vmatpush3.msra.mxu0 %v166_v31 }
  0x63   :  { %513 = vmatprep.subr.mxu0 %v625_v0 }
  0x64   :  { %514 = vmatpush3.msra.mxu0 %v165_v32 }
  0x65   :  { %515 = vmatprep.subr.mxu0 %v625_v0 }
  0x66   :  { %516 = vmatpush3.msra.mxu0 %v164_v33 }
 0x107   :  { %v153_v35 = vpop.f32.mrf.mxu0 }
 0x108   :  { %v154_v36 = vadd.f32 %v360_v34, %v153_v35 }
 0x109   :  { %v449_v37 = vpop.f32.mrf.mxu0 }
 0x10a   :  { %v361_v38 = vmul.f32 -1.442695, %v154_v36 }
 0x10c   :  { %528 = vpow2.f32 %v361_v38 }
 0x119   :  { %v529_v39 = vpop.eup %528 }
 0x11a   :  { %v160_v40 = vadd.f32 1.0, %v529_v39 }
 0x11c   :  { %530 = vrcp.f32 %v160_v40 }
 0x129   :  { %v531_v41 = vpop.eup %530 }
 0x12a   :  { %v163_v42 = vadd.f32 %v531_v41, %v692_v17 }
 0x12c   :  { %483 = vmatmul.mubr.f32.vlgmr.msra.gmra.mxu1 %v163_v42 }
 0x1ec   :  { %v246_v43 = vpop.f32.mrf.mxu1 }
 0x1ed   :  { %v250_v44 = vmul.f32 0.03125, %v246_v43 }
 0x1ee   :  { %v484_v45 = vpop.f32.mrf.mxu1 }
 0x1ef   :  { %v251_v46 = vsub.f32 %v163_v42, %v250_v44 }
 0x1f1   :  { %v252_v47 = vmul.f32 %v251_v46, %v251_v46 }
 0x1f3   :  { %518 = vmatmul.mubr.f32.vlgmr.msra.gmra.mxu0 %v252_v47 }
 0x2b3   :  { %v319_v48 = vpop.f32.mrf.mxu0 }
 0x2b4   :  { %v323_v49 = vmul.f32 0.03125, %v319_v48 }
 0x2b5   :  { %v519_v50 = vpop.f32.mrf.mxu0 }
 0x2b6   :  { %v324_v51 = vadd.f32 1e-05, %v323_v49 }
 0x2b8   :  { %532 = vrsqrt.f32 %v324_v51 }
 0x2c5   :  { %v533_v52 = vpop.eup %532 }
 0x2c6   :  { %v326_v54 = vmul.f32 %v533_v52, %v251_v46 }
 0x2c8   :  { %v334_v56 = vmul.f32 %v362_v53, %v326_v54 }
 0x2ca   :  { %v342_v57 = vadd.f32 %v363_v55, %v334_v56 }
 0x2cc   :  { %343 = vst [vmem:[#allocation8] sm:$0xf] %v342_v57 }
 0x2cd   :  { %605 = shalt.err (!%p602_p5)
}
 0x2ce   :  { %353 = dma.vmem_to_hbm [thread:$0]  %s351_s17, 64, %s748_s6, [#allocation4]  }
 0x2cf   :  { %618 = dma.done.wait [#allocation4], 64  }
 0x2d0   :  { %619 = vsyncadd [#allocation4], 4294967232 }
 0x2d1   :  { %357 = vsyncpa [#allocation3], 1 }
 0x2d2   :  { %358 = vsyncpa [#allocation6], 1 }
 0x2d3   :  { %359 = vsyncpa [#allocation4], 1 }

</bundles_post_ra>
